<compile_context>
chip_gen: v6e
topology: v6e:2x2x1
jax: 0.10.0
libtpu: 0.0.40
codegen_flags: <defaults>
</compile_context>

<pallas_src>
import jax
import jax.numpy as jnp
from jax.experimental import pallas as pl
from jax.experimental.pallas import tpu as pltpu

hidden_dim = 64
hidden_dim1 = 128
traj_length = 60
z_length = 10

IN_DIM = traj_length * 2        # 120
ENC_OUT = z_length * 2          # 20


def _cdiv(a, b):
    return -(-a // b)


def _round_up(n, m):
    return ((n + m - 1) // m) * m


def _choose_tile_b(B, target=1024, min_steps=4):
    """Batch tile: multiple of 8, ~`target` rows, even #grid steps (>= min_steps
    when the batch allows it) so both v7x TensorCores get work."""
    B8 = _round_up(max(B, 1), 8)
    steps = max(min_steps, 2 * _cdiv(B8, 2 * target))   # even, >= min_steps
    tile = _round_up(_cdiv(B8, steps), 8)
    return max(8, min(tile, B8))


# --------------------------------------------------------------------------
# Kernel: one batch tile per grid step; all weights resident in VMEM.
# --------------------------------------------------------------------------
def vae_kernel(x_ref, eps_ref,
               w1_ref, b1_ref, w2_ref, b2_ref, w3_ref, b3_ref,
               w4_ref, b4_ref, w5_ref, b5_ref, w6_ref, b6_ref,
               recon_ref, enc_ref):
    f32 = jnp.float32
    bf16 = jnp.bfloat16

    # encoder: Linear(120,128) -> ReLU -> Linear(128,64) -> ReLU -> Linear(64,20)
    x = x_ref[...].astype(bf16)                                           # (T, 120)
    h = jnp.dot(x, w1_ref[...], preferred_element_type=f32) + b1_ref[...]
    h = jnp.maximum(h, 0.0).astype(bf16)
    h = jnp.dot(h, w2_ref[...], preferred_element_type=f32) + b2_ref[...]
    h = jnp.maximum(h, 0.0).astype(bf16)
    head = jnp.dot(h, w3_ref[...], preferred_element_type=f32) + b3_ref[...]   # (T, 20)

    # combined [mu | log_var] output block (single narrow DMA stream)
    enc_ref[...] = head

    # reparameterize: z = mu + eps * exp(0.5 * log_var)   (f32 on VPU/EUP)
    mu = head[:, :z_length]
    log_var = head[:, z_length:]
    z = mu + eps_ref[...] * jnp.exp(0.5 * log_var)

    # decoder: Linear(10,64) -> ReLU -> Linear(64,128) -> ReLU -> Linear(128,120)
    d = jnp.dot(z.astype(bf16), w4_ref[...], preferred_element_type=f32) + b4_ref[...]
    d = jnp.maximum(d, 0.0).astype(bf16)
    d = jnp.dot(d, w5_ref[...], preferred_element_type=f32) + b5_ref[...]
    d = jnp.maximum(d, 0.0).astype(bf16)
    recon_ref[...] = jnp.dot(d, w6_ref[...], preferred_element_type=f32) + b6_ref[...]


# --------------------------------------------------------------------------
# Wrapper: weight prep, adaptive batch grid, BlockSpecs.
# --------------------------------------------------------------------------
def _prepare_kernel_params(params):
    """Cast matmul weights to bf16 (f32 accumulation happens on the MXU);
    biases stay f32.  No lane padding of any weight is needed: full-shape
    blocks are legal for the narrow dims."""
    (w1, b1), (w2, b2), (w3, b3), (w4, b4), (w5, b5), (w6, b6) = params
    ws = [jnp.asarray(w, jnp.bfloat16) for w in (w1, w2, w3, w4, w5, w6)]
    bs = [jnp.asarray(b, jnp.float32).reshape(1, -1) for b in (b1, b2, b3, b4, b5, b6)]
    flat = []
    for w, b in zip(ws, bs):
        flat += [w, b]
    return flat


def vae_forward(x, eps, params, *, target_tile=1024):
    """x: (..., traj_length*2) f32 (flattened like x.view(-1, 120)),
       eps: (B, z_length) f32, params: 6 (W,b) pairs in (in,out)/(1,out) layout.
       Returns (recon, mu, log_var)."""
    x = jnp.asarray(x, jnp.float32).reshape(-1, IN_DIM)
    B = x.shape[0]
    eps = jnp.asarray(eps, jnp.float32).reshape(B, z_length)

    tile_b = _choose_tile_b(B, target=target_tile)
    Bp = _round_up(B, tile_b)
    if Bp != B:                       # batch pad only when needed (rows only)
        x = jnp.pad(x, ((0, Bp - B), (0, 0)))
        eps = jnp.pad(eps, ((0, Bp - B), (0, 0)))

    flat = _prepare_kernel_params(params)
    grid = (Bp // tile_b,)

    def batch_spec(cols):
        return pl.BlockSpec((tile_b, cols), lambda i: (i, 0))

    def weight_spec(arr):
        return pl.BlockSpec(arr.shape, lambda i: (0, 0))   # resident across grid

    in_specs = [batch_spec(IN_DIM), batch_spec(z_length)] + [weight_spec(a) for a in flat]
    out_specs = (batch_spec(IN_DIM), batch_spec(ENC_OUT))
    out_shapes = (
        jax.ShapeDtypeStruct((Bp, IN_DIM), jnp.float32),    # reconstruction
        jax.ShapeDtypeStruct((Bp, ENC_OUT), jnp.float32),   # [mu | log_var]
    )

    # Advisory cost estimate (helps XLA schedule neighbours around the call).
    flops = 2 * Bp * (IN_DIM * hidden_dim1 + hidden_dim1 * hidden_dim
                      + hidden_dim * ENC_OUT + z_length * hidden_dim
                      + hidden_dim * hidden_dim1 + hidden_dim1 * IN_DIM)
    weight_bytes = sum(int(a.size) * a.dtype.itemsize for a in flat)
    bytes_accessed = 4 * Bp * (IN_DIM + z_length + IN_DIM + ENC_OUT) + weight_bytes
    cost = pl.CostEstimate(flops=int(flops),
                           transcendentals=int(Bp * z_length),
                           bytes_accessed=int(bytes_accessed))

    recon, enc = pl.pallas_call(
        vae_kernel,
        out_shape=out_shapes,
        grid=grid,
        in_specs=in_specs,
        out_specs=out_specs,
        compiler_params=pltpu.CompilerParams(
            dimension_semantics=("parallel",),          # megacore split on v7x
            vmem_limit_bytes=32 * 1024 * 1024,          # plenty for <=2K-row tiles, fits v7x
        ),
        cost_estimate=cost,
    )(x, eps, *flat)

    if Bp != B:
        recon, enc = recon[:B], enc[:B]
    return recon, enc[:, :z_length], enc[:, z_length:]


# --------------------------------------------------------------------------
# Init + pure-JAX references (mirror the PyTorch module).
# --------------------------------------------------------------------------
def init_params(key):
    dims = [
        (IN_DIM, hidden_dim1),       # encoder L1
        (hidden_dim1, hidden_dim),   # encoder L2
        (hidden_dim, ENC_OUT),       # encoder L3
        (z_length, hidden_dim),      # decoder L1
        (hidden_dim, hidden_dim1),   # decoder L2
        (hidden_dim1, IN_DIM),       # decoder L3
    ]
    params = []
    for (fan_in, fan_out) in dims:
        key, kw, kb = jax.random.split(key, 3)
        bound = 1.0 / jnp.sqrt(fan_in)
        w = jax.random.uniform(kw, (fan_in, fan_out), jnp.float32, -bound, bound)
        b = jax.random.uniform(kb, (1, fan_out), jnp.float32, -bound, bound)
        params.append((w, b))
    return params


def reference_forward(x, eps, params, *, matmul_dtype=jnp.float32):
    """Pure-JAX reference.  matmul_dtype=bfloat16 mirrors the kernel's
    bf16-operand / f32-accumulate MXU feeding exactly."""
    def lin(h, w, b):
        return jnp.dot(h.astype(matmul_dtype), jnp.asarray(w, matmul_dtype),
                       preferred_element_type=jnp.float32) + jnp.asarray(b, jnp.float32).reshape(1, -1)

    (w1, b1), (w2, b2), (w3, b3), (w4, b4), (w5, b5), (w6, b6) = params
    h = jnp.maximum(lin(x, w1, b1), 0.0)
    h = jnp.maximum(lin(h, w2, b2), 0.0)
    enc = lin(h, w3, b3)
    mu, log_var = enc[:, :z_length], enc[:, z_length:]
    z = mu + eps * jnp.exp(0.5 * log_var)
    d = jnp.maximum(lin(z, w4, b4), 0.0)
    d = jnp.maximum(lin(d, w5, b5), 0.0)
    return lin(d, w6, b6), mu, log_var


if __name__ == "__main__":
    key = jax.random.PRNGKey(0)
    k_params, k_x, k_eps = jax.random.split(key, 3)
    params = init_params(k_params)

    # batch=4: exercises the batch-padding / 1-step path.
    # batch=512: representative; 4 even grid steps of 128 rows ("parallel").
    for batch in (4, 512):
        kx = jax.random.fold_in(k_x, batch)
        ke = jax.random.fold_in(k_eps, batch)
        # Module's forward does x.view(-1, traj_length*2); feed (B, 60, 2).
        x = jax.random.normal(kx, (batch, traj_length, 2), jnp.float32)
        eps = jax.random.normal(ke, (batch, z_length), jnp.float32)

        recon, mu, log_var = vae_forward(x, eps, params)
        jax.block_until_ready((recon, mu, log_var))

        x_flat = x.reshape(-1, IN_DIM)
        # Strict check vs. a reference with identical bf16-operand matmuls.
        r_b, mu_b, lv_b = reference_forward(x_flat, eps, params, matmul_dtype=jnp.bfloat16)
        assert jnp.allclose(recon, r_b, atol=1e-3, rtol=1e-3)
        assert jnp.allclose(mu, mu_b, atol=1e-3, rtol=1e-3)
        assert jnp.allclose(log_var, lv_b, atol=1e-3, rtol=1e-3)
        # Loose sanity check vs. the exact-f32 module semantics.
        r_f, mu_f, lv_f = reference_forward(x_flat, eps, params, matmul_dtype=jnp.float32)
        assert jnp.allclose(recon, r_f, atol=1e-1, rtol=5e-2)
        assert jnp.allclose(mu, mu_f, atol=5e-2, rtol=5e-2)
        assert jnp.allclose(log_var, lv_f, atol=5e-2, rtol=5e-2)

    print("KERNEL_OK")
</pallas_src>

<mosaic_0001>
module attributes {stable_mosaic.version = 11 : i64} {
  func.func @vae_kernel(%arg0: i32, %arg1: memref<8x120xf32, #tpu.memory_space<vmem>>, %arg2: memref<8x10xf32, #tpu.memory_space<vmem>>, %arg3: memref<120x128xbf16, #tpu.memory_space<vmem>>, %arg4: memref<1x128xf32, #tpu.memory_space<vmem>>, %arg5: memref<128x64xbf16, #tpu.memory_space<vmem>>, %arg6: memref<1x64xf32, #tpu.memory_space<vmem>>, %arg7: memref<64x20xbf16, #tpu.memory_space<vmem>>, %arg8: memref<1x20xf32, #tpu.memory_space<vmem>>, %arg9: memref<10x64xbf16, #tpu.memory_space<vmem>>, %arg10: memref<1x64xf32, #tpu.memory_space<vmem>>, %arg11: memref<64x128xbf16, #tpu.memory_space<vmem>>, %arg12: memref<1x128xf32, #tpu.memory_space<vmem>>, %arg13: memref<128x120xbf16, #tpu.memory_space<vmem>>, %arg14: memref<1x120xf32, #tpu.memory_space<vmem>>, %arg15: memref<8x120xf32, #tpu.memory_space<vmem>>, %arg16: memref<8x20xf32, #tpu.memory_space<vmem>>) attributes {dimension_semantics = [#tpu.dimension_semantics<parallel>], iteration_bounds = array<i64: 1>, scalar_prefetch = 0 : i64, scratch_operands = 0 : i64, tpu.core_type = #tpu.core_type<tc>, window_params = [{transform_indices = @transform_0, window_bounds = array<i64: 8, 120>}, {transform_indices = @transform_1, window_bounds = array<i64: 8, 10>}, {pipeline_mode = #tpu.pipeline_mode<synchronous>, transform_indices = @transform_2, window_bounds = array<i64: 120, 128>}, {pipeline_mode = #tpu.pipeline_mode<synchronous>, transform_indices = @transform_3, window_bounds = array<i64: 1, 128>}, {pipeline_mode = #tpu.pipeline_mode<synchronous>, transform_indices = @transform_4, window_bounds = array<i64: 128, 64>}, {pipeline_mode = #tpu.pipeline_mode<synchronous>, transform_indices = @transform_5, window_bounds = array<i64: 1, 64>}, {pipeline_mode = #tpu.pipeline_mode<synchronous>, transform_indices = @transform_6, window_bounds = array<i64: 64, 20>}, {pipeline_mode = #tpu.pipeline_mode<synchronous>, transform_indices = @transform_7, window_bounds = array<i64: 1, 20>}, {pipeline_mode = #tpu.pipeline_mode<synchronous>, transform_indices = @transform_8, window_bounds = array<i64: 10, 64>}, {pipeline_mode = #tpu.pipeline_mode<synchronous>, transform_indices = @transform_9, window_bounds = array<i64: 1, 64>}, {pipeline_mode = #tpu.pipeline_mode<synchronous>, transform_indices = @transform_10, window_bounds = array<i64: 64, 128>}, {pipeline_mode = #tpu.pipeline_mode<synchronous>, transform_indices = @transform_11, window_bounds = array<i64: 1, 128>}, {pipeline_mode = #tpu.pipeline_mode<synchronous>, transform_indices = @transform_12, window_bounds = array<i64: 128, 120>}, {pipeline_mode = #tpu.pipeline_mode<synchronous>, transform_indices = @transform_13, window_bounds = array<i64: 1, 120>}, {transform_indices = @transform_14, window_bounds = array<i64: 8, 120>}, {transform_indices = @transform_15, window_bounds = array<i64: 8, 20>}]} {
    %c0 = arith.constant 0 : index
    %c0_0 = arith.constant 0 : index
    %0 = vector.load %arg1[%c0, %c0_0] : memref<8x120xf32, #tpu.memory_space<vmem>>, vector<8x120xf32>
    %1 = arith.truncf %0 : vector<8x120xf32> to vector<8x120xbf16>
    %c0_1 = arith.constant 0 : index
    %c0_2 = arith.constant 0 : index
    %2 = vector.load %arg3[%c0_1, %c0_2] : memref<120x128xbf16, #tpu.memory_space<vmem>>, vector<120x128xbf16>
    %cst = arith.constant dense<0.000000e+00> : vector<8x128xf32>
    %3 = tpu.matmul %1, %2, %cst {dimension_numbers = #tpu.dot_dimension_numbers<[1], [0], [0], [1], [0, 0, 1, 1], [], []>} : vector<8x120xbf16>, vector<120x128xbf16>, vector<8x128xf32> -> vector<8x128xf32>
    %c0_3 = arith.constant 0 : index
    %c0_4 = arith.constant 0 : index
    %4 = vector.load %arg4[%c0_3, %c0_4] : memref<1x128xf32, #tpu.memory_space<vmem>>, vector<1x128xf32>
    %5 = vector.broadcast %4 : vector<1x128xf32> to vector<8x128xf32>
    %6 = arith.addf %3, %5 : vector<8x128xf32>
    %cst_5 = arith.constant 0.000000e+00 : f32
    %7 = vector.broadcast %cst_5 : f32 to vector<8x128xf32>
    %8 = arith.maximumf %6, %7 : vector<8x128xf32>
    %9 = arith.truncf %8 : vector<8x128xf32> to vector<8x128xbf16>
    %c0_6 = arith.constant 0 : index
    %c0_7 = arith.constant 0 : index
    %10 = vector.load %arg5[%c0_6, %c0_7] : memref<128x64xbf16, #tpu.memory_space<vmem>>, vector<128x64xbf16>
    %cst_8 = arith.constant dense<0.000000e+00> : vector<8x64xf32>
    %11 = tpu.matmul %9, %10, %cst_8 {dimension_numbers = #tpu.dot_dimension_numbers<[1], [0], [0], [1], [0, 0, 1, 1], [], []>} : vector<8x128xbf16>, vector<128x64xbf16>, vector<8x64xf32> -> vector<8x64xf32>
    %c0_9 = arith.constant 0 : index
    %c0_10 = arith.constant 0 : index
    %12 = vector.load %arg6[%c0_9, %c0_10] : memref<1x64xf32, #tpu.memory_space<vmem>>, vector<1x64xf32>
    %13 = vector.broadcast %12 : vector<1x64xf32> to vector<8x64xf32>
    %14 = arith.addf %11, %13 : vector<8x64xf32>
    %cst_11 = arith.constant 0.000000e+00 : f32
    %15 = vector.broadcast %cst_11 : f32 to vector<8x64xf32>
    %16 = arith.maximumf %14, %15 : vector<8x64xf32>
    %17 = arith.truncf %16 : vector<8x64xf32> to vector<8x64xbf16>
    %c0_12 = arith.constant 0 : index
    %c0_13 = arith.constant 0 : index
    %18 = vector.load %arg7[%c0_12, %c0_13] : memref<64x20xbf16, #tpu.memory_space<vmem>>, vector<64x20xbf16>
    %cst_14 = arith.constant dense<0.000000e+00> : vector<8x20xf32>
    %19 = tpu.matmul %17, %18, %cst_14 {dimension_numbers = #tpu.dot_dimension_numbers<[1], [0], [0], [1], [0, 0, 1, 1], [], []>} : vector<8x64xbf16>, vector<64x20xbf16>, vector<8x20xf32> -> vector<8x20xf32>
    %c0_15 = arith.constant 0 : index
    %c0_16 = arith.constant 0 : index
    %20 = vector.load %arg8[%c0_15, %c0_16] : memref<1x20xf32, #tpu.memory_space<vmem>>, vector<1x20xf32>
    %21 = vector.broadcast %20 : vector<1x20xf32> to vector<8x20xf32>
    %22 = arith.addf %19, %21 : vector<8x20xf32>
    %c0_17 = arith.constant 0 : index
    %c0_18 = arith.constant 0 : index
    %23 = vector.load %arg16[%c0_17, %c0_18] : memref<8x20xf32, #tpu.memory_space<vmem>>, vector<8x20xf32>
    tpu.vector_store %arg16[%c0_17, %c0_18], %22 {strides = array<i32>} : memref<8x20xf32, #tpu.memory_space<vmem>>, vector<8x20xf32>,
    %24 = vector.extract_strided_slice %22 {offsets = [0, 0], sizes = [8, 10], strides = [1, 1]} : vector<8x20xf32> to vector<8x10xf32>
    %25 = vector.extract_strided_slice %22 {offsets = [0, 10], sizes = [8, 10], strides = [1, 1]} : vector<8x20xf32> to vector<8x10xf32>
    %c0_19 = arith.constant 0 : index
    %c0_20 = arith.constant 0 : index
    %26 = vector.load %arg2[%c0_19, %c0_20] : memref<8x10xf32, #tpu.memory_space<vmem>>, vector<8x10xf32>
    %cst_21 = arith.constant 5.000000e-01 : f32
    %27 = vector.broadcast %cst_21 : f32 to vector<8x10xf32>
    %28 = arith.mulf %27, %25 : vector<8x10xf32>
    %29 = math.exp %28 : vector<8x10xf32>
    %30 = arith.mulf %26, %29 : vector<8x10xf32>
    %31 = arith.addf %24, %30 : vector<8x10xf32>
    %32 = arith.truncf %31 : vector<8x10xf32> to vector<8x10xbf16>
    %c0_22 = arith.constant 0 : index
    %c0_23 = arith.constant 0 : index
    %33 = vector.load %arg9[%c0_22, %c0_23] : memref<10x64xbf16, #tpu.memory_space<vmem>>, vector<10x64xbf16>
    %cst_24 = arith.constant dense<0.000000e+00> : vector<8x64xf32>
    %34 = tpu.matmul %32, %33, %cst_24 {dimension_numbers = #tpu.dot_dimension_numbers<[1], [0], [0], [1], [0, 0, 1, 1], [], []>} : vector<8x10xbf16>, vector<10x64xbf16>, vector<8x64xf32> -> vector<8x64xf32>
    %c0_25 = arith.constant 0 : index
    %c0_26 = arith.constant 0 : index
    %35 = vector.load %arg10[%c0_25, %c0_26] : memref<1x64xf32, #tpu.memory_space<vmem>>, vector<1x64xf32>
    %36 = vector.broadcast %35 : vector<1x64xf32> to vector<8x64xf32>
    %37 = arith.addf %34, %36 : vector<8x64xf32>
    %cst_27 = arith.constant 0.000000e+00 : f32
    %38 = vector.broadcast %cst_27 : f32 to vector<8x64xf32>
    %39 = arith.maximumf %37, %38 : vector<8x64xf32>
    %40 = arith.truncf %39 : vector<8x64xf32> to vector<8x64xbf16>
    %c0_28 = arith.constant 0 : index
    %c0_29 = arith.constant 0 : index
    %41 = vector.load %arg11[%c0_28, %c0_29] : memref<64x128xbf16, #tpu.memory_space<vmem>>, vector<64x128xbf16>
    %cst_30 = arith.constant dense<0.000000e+00> : vector<8x128xf32>
    %42 = tpu.matmul %40, %41, %cst_30 {dimension_numbers = #tpu.dot_dimension_numbers<[1], [0], [0], [1], [0, 0, 1, 1], [], []>} : vector<8x64xbf16>, vector<64x128xbf16>, vector<8x128xf32> -> vector<8x128xf32>
    %c0_31 = arith.constant 0 : index
    %c0_32 = arith.constant 0 : index
    %43 = vector.load %arg12[%c0_31, %c0_32] : memref<1x128xf32, #tpu.memory_space<vmem>>, vector<1x128xf32>
    %44 = vector.broadcast %43 : vector<1x128xf32> to vector<8x128xf32>
    %45 = arith.addf %42, %44 : vector<8x128xf32>
    %cst_33 = arith.constant 0.000000e+00 : f32
    %46 = vector.broadcast %cst_33 : f32 to vector<8x128xf32>
    %47 = arith.maximumf %45, %46 : vector<8x128xf32>
    %48 = arith.truncf %47 : vector<8x128xf32> to vector<8x128xbf16>
    %c0_34 = arith.constant 0 : index
    %c0_35 = arith.constant 0 : index
    %49 = vector.load %arg13[%c0_34, %c0_35] : memref<128x120xbf16, #tpu.memory_space<vmem>>, vector<128x120xbf16>
    %cst_36 = arith.constant dense<0.000000e+00> : vector<8x120xf32>
    %50 = tpu.matmul %48, %49, %cst_36 {dimension_numbers = #tpu.dot_dimension_numbers<[1], [0], [0], [1], [0, 0, 1, 1], [], []>} : vector<8x128xbf16>, vector<128x120xbf16>, vector<8x120xf32> -> vector<8x120xf32>
    %c0_37 = arith.constant 0 : index
    %c0_38 = arith.constant 0 : index
    %51 = vector.load %arg14[%c0_37, %c0_38] : memref<1x120xf32, #tpu.memory_space<vmem>>, vector<1x120xf32>
    %52 = vector.broadcast %51 : vector<1x120xf32> to vector<8x120xf32>
    %53 = arith.addf %50, %52 : vector<8x120xf32>
    %c0_39 = arith.constant 0 : index
    %c0_40 = arith.constant 0 : index
    %54 = vector.load %arg15[%c0_39, %c0_40] : memref<8x120xf32, #tpu.memory_space<vmem>>, vector<8x120xf32>
    tpu.vector_store %arg15[%c0_39, %c0_40], %53 {strides = array<i32>} : memref<8x120xf32, #tpu.memory_space<vmem>>, vector<8x120xf32>,
    return
  }
  func.func @transform_0(%arg0: i32) -> (i32, i32) {
    %c0_i32 = arith.constant 0 : i32
    %c0_i32_0 = arith.constant 0 : i32
    return %arg0, %c0_i32 : i32, i32
  }
  func.func @transform_1(%arg0: i32) -> (i32, i32) {
    %c0_i32 = arith.constant 0 : i32
    %c0_i32_0 = arith.constant 0 : i32
    return %arg0, %c0_i32 : i32, i32
  }
  func.func @transform_2(%arg0: i32) -> (i32, i32) {
    %c0_i32 = arith.constant 0 : i32
    %c0_i32_0 = arith.constant 0 : i32
    %c0_i32_1 = arith.constant 0 : i32
    return %c0_i32, %c0_i32_0 : i32, i32
  }
  func.func @transform_3(%arg0: i32) -> (i32, i32) {
    %c0_i32 = arith.constant 0 : i32
    %c0_i32_0 = arith.constant 0 : i32
    %c0_i32_1 = arith.constant 0 : i32
    return %c0_i32, %c0_i32_0 : i32, i32
  }
  func.func @transform_4(%arg0: i32) -> (i32, i32) {
    %c0_i32 = arith.constant 0 : i32
    %c0_i32_0 = arith.constant 0 : i32
    %c0_i32_1 = arith.constant 0 : i32
    return %c0_i32, %c0_i32_0 : i32, i32
  }
  func.func @transform_5(%arg0: i32) -> (i32, i32) {
    %c0_i32 = arith.constant 0 : i32
    %c0_i32_0 = arith.constant 0 : i32
    %c0_i32_1 = arith.constant 0 : i32
    return %c0_i32, %c0_i32_0 : i32, i32
  }
  func.func @transform_6(%arg0: i32) -> (i32, i32) {
    %c0_i32 = arith.constant 0 : i32
    %c0_i32_0 = arith.constant 0 : i32
    %c0_i32_1 = arith.constant 0 : i32
    return %c0_i32, %c0_i32_0 : i32, i32
  }
  func.func @transform_7(%arg0: i32) -> (i32, i32) {
    %c0_i32 = arith.constant 0 : i32
    %c0_i32_0 = arith.constant 0 : i32
    %c0_i32_1 = arith.constant 0 : i32
    return %c0_i32, %c0_i32_0 : i32, i32
  }
  func.func @transform_8(%arg0: i32) -> (i32, i32) {
    %c0_i32 = arith.constant 0 : i32
    %c0_i32_0 = arith.constant 0 : i32
    %c0_i32_1 = arith.constant 0 : i32
    return %c0_i32, %c0_i32_0 : i32, i32
  }
  func.func @transform_9(%arg0: i32) -> (i32, i32) {
    %c0_i32 = arith.constant 0 : i32
    %c0_i32_0 = arith.constant 0 : i32
    %c0_i32_1 = arith.constant 0 : i32
    return %c0_i32, %c0_i32_0 : i32, i32
  }
  func.func @transform_10(%arg0: i32) -> (i32, i32) {
    %c0_i32 = arith.constant 0 : i32
    %c0_i32_0 = arith.constant 0 : i32
    %c0_i32_1 = arith.constant 0 : i32
    return %c0_i32, %c0_i32_0 : i32, i32
  }
  func.func @transform_11(%arg0: i32) -> (i32, i32) {
    %c0_i32 = arith.constant 0 : i32
    %c0_i32_0 = arith.constant 0 : i32
    %c0_i32_1 = arith.constant 0 : i32
    return %c0_i32, %c0_i32_0 : i32, i32
  }
  func.func @transform_12(%arg0: i32) -> (i32, i32) {
    %c0_i32 = arith.constant 0 : i32
    %c0_i32_0 = arith.constant 0 : i32
    %c0_i32_1 = arith.constant 0 : i32
    return %c0_i32, %c0_i32_0 : i32, i32
  }
  func.func @transform_13(%arg0: i32) -> (i32, i32) {
    %c0_i32 = arith.constant 0 : i32
    %c0_i32_0 = arith.constant 0 : i32
    %c0_i32_1 = arith.constant 0 : i32
    return %c0_i32, %c0_i32_0 : i32, i32
  }
  func.func @transform_14(%arg0: i32) -> (i32, i32) {
    %c0_i32 = arith.constant 0 : i32
    %c0_i32_0 = arith.constant 0 : i32
    return %arg0, %c0_i32 : i32, i32
  }
  func.func @transform_15(%arg0: i32) -> (i32, i32) {
    %c0_i32 = arith.constant 0 : i32
    %c0_i32_0 = arith.constant 0 : i32
    return %arg0, %c0_i32 : i32, i32
  }
}

</mosaic_0001>

<bundles_post_ra>
// kernel: tpu_custom_call.1
= control target key start
LH: loop header
LB: loop body
LE: loop exit
PB: predicated region body
PF: predicated region fallthrough
CT: control target
= control target key end

     0   :  { %21 = vsyncpa [#allocation3], 0  ;;  %vm125_vm0 = vcmask 1043456   ;;  %v924_v1 = vmov 0.0   ;;  %vm925_vm1 = vmmov 0   ;;  %s1187_s0 = inlined_call_operand.vmem [shape: f32[8,120], index: 0, kind: input, shape index: {}]   ;;  %s1188_s1 = inlined_call_operand.vmem [shape: f32[8,10], index: 1, kind: input, shape index: {}]   ;;  %s1189_s2 = inlined_call_operand.vmem [shape: bf16[120,128], index: 2, kind: input, shape index: {}]   ;;  %s1190_s3 = inlined_call_operand.vmem [shape: f32[1,128], index: 3, kind: input, shape index: {}]   ;;  %s1191_s4 = inlined_call_operand.vmem [shape: bf16[128,64], index: 4, kind: input, shape index: {}]   ;;  %s1192_s5 = inlined_call_operand.vmem [shape: f32[1,64], index: 5, kind: input, shape index: {}]   ;;  %s1193_s6 = inlined_call_operand.vmem [shape: bf16[64,20], index: 6, kind: input, shape index: {}]   ;;  %s1194_s7 = inlined_call_operand.vmem [shape: f32[1,20], index: 7, kind: input, shape index: {}]   ;;  %s1195_s8 = inlined_call_operand.vmem [shape: bf16[10,64], index: 8, kind: input, shape index: {}]   ;;  %s1196_s9 = inlined_call_operand.vmem [shape: f32[1,64], index: 9, kind: input, shape index: {}]   ;;  %s1197_s10 = inlined_call_operand.vmem [shape: bf16[64,128], index: 10, kind: input, shape index: {}]   ;;  %s1198_s11 = inlined_call_operand.vmem [shape: f32[1,128], index: 11, kind: input, shape index: {}]   ;;  %s1199_s12 = inlined_call_operand.vmem [shape: bf16[128,120], index: 12, kind: input, shape index: {}]   ;;  %s1200_s13 = inlined_call_operand.vmem [shape: f32[1,120], index: 13, kind: input, shape index: {}]   ;;  %s1201_s14 = inlined_call_operand.hbm [shape: f32[8,120], index: 14, kind: output, shape index: {0}]   ;;  %s1202_s15 = inlined_call_operand.hbm [shape: f32[8,20], index: 15, kind: output, shape index: {1}]  }
   0x1   :  { %v845_v0 = vld [vmem:[%s1189_s2 + $0x38] ss:$0 sps:$4 sm:$0xff]   ;;  %750 = vmatprep.subr.bf16.mxu0 %v924_v1  ;;  %770 = vmatprep.subr.bf16.mxu1 %v924_v1  ;;  %v846_v3 = vld [vmem:[%s1189_s2 + $0x30] sm:$0xff]   ;;  %v847_v4 = vld [vmem:[%s1189_s2 + $0x28] sm:$0xff]  }
   0x2   :  { %v127_v2 = vsel %vm125_vm0, %v845_v0, 0  ;;  %766 = vmatprep.mubr.msk.bf16.mxu0 %vm925_vm1, %v924_v1  ;;  %786 = vmatprep.mubr.msk.bf16.mxu1 %vm925_vm1, %v924_v1  ;;  %v853_v5 = vld [vmem:[%s1191_s4 + $0x38] sm:$0xff]   ;;  %v848_v6 = vld [vmem:[%s1189_s2 + $0x20] sm:$0xff]   ;;  %v854_v7 = vld [vmem:[%s1191_s4 + $0x30] sm:$0xff]  }
   0x3   :  { %751 = vmatpush3.bf16.msra.mxu0 %v127_v2  ;;  %771 = vmatpush3.bf16.msra.mxu1 %v853_v5  ;;  %v849_v8 = vld [vmem:[%s1189_s2 + $0x18] sm:$0xff]   ;;  %v855_v9 = vld [vmem:[%s1191_s4 + $0x28] sm:$0xff]   ;;  %v850_v10 = vld [vmem:[%s1189_s2 + $0x10] sm:$0xff]  }
   0x4   :  { %752 = vmatprep.subr.bf16.mxu0 %v924_v1  ;;  %772 = vmatprep.subr.bf16.mxu1 %v924_v1  ;;  %v856_v11 = vld [vmem:[%s1191_s4 + $0x20] sm:$0xff]   ;;  %v851_v12 = vld [vmem:[%s1189_s2 + $0x8] sm:$0xff]   ;;  %v857_v13 = vld [vmem:[%s1191_s4 + $0x18] sm:$0xff]  }
   0x5   :  { %v852_v14 = vld [vmem:[%s1189_s2] sm:$0xff]   ;;  %v858_v16 = vld [vmem:[%s1191_s4 + $0x10] sm:$0xff]  }
   0x6   :  { %v52_v15 = vld [vmem:[%s1187_s0] sm:$0xff] }
   0x7   :  { %753 = vmatpush3.bf16.msra.mxu0 %v846_v3  ;;  %773 = vmatpush3.bf16.msra.mxu1 %v854_v7 }
   0x8   :  { %754 = vmatprep.subr.bf16.mxu0 %v924_v1  ;;  %774 = vmatprep.subr.bf16.mxu1 %v924_v1 }
   0xb   :  { %755 = vmatpush3.bf16.msra.mxu0 %v847_v4  ;;  %775 = vmatpush3.bf16.msra.mxu1 %v855_v9 }
   0xc   :  { %756 = vmatprep.subr.bf16.mxu0 %v924_v1  ;;  %776 = vmatprep.subr.bf16.mxu1 %v924_v1 }
   0xf   :  { %757 = vmatpush3.bf16.msra.mxu0 %v848_v6  ;;  %777 = vmatpush3.bf16.msra.mxu1 %v856_v11 }
  0x10   :  { %758 = vmatprep.subr.bf16.mxu0 %v924_v1  ;;  %778 = vmatprep.subr.bf16.mxu1 %v924_v1 }
  0x13   :  { %759 = vmatpush3.bf16.msra.mxu0 %v849_v8  ;;  %779 = vmatpush3.bf16.msra.mxu1 %v857_v13 }
  0x14   :  { %760 = vmatprep.subr.bf16.mxu0 %v924_v1 }
  0x17   :  { %761 = vmatpush3.bf16.msra.mxu0 %v850_v10 }
  0x18   :  { %762 = vmatprep.subr.bf16.mxu0 %v924_v1 }
  0x1b   :  { %763 = vmatpush3.bf16.msra.mxu0 %v851_v12 }
  0x1c   :  { %22 = vsyncpa [#allocation5], 0  ;;  %764 = vmatprep.subr.bf16.mxu0 %v924_v1  ;;  %780 = vmatprep.subr.bf16.mxu1 %v924_v1  ;;  %v53_v17 = vpack.c.bf16 %v52_v15, %v52_v15  ;;  %vm121_vm2 = vcmask 982016   ;;  %v859_v18 = vld [vmem:[%s1191_s4 + $0x8] sm:$0xff]   ;;  %v860_v19 = vld [vmem:[%s1191_s4] sm:$0xff]   ;;  %vm323_vm3 = vcmask 523264  }
  0x1d   :  { %781 = vmatpush3.bf16.msra.mxu1 %v858_v16  ;;  %v668_v20 = vld [vmem:[%s1190_s3] ss:$0 sm:$0xff]  ;;  %v861_v26 = vld [vmem:[%s1193_s6 + $0x18] sm:$0xff]   ;;  %v862_v29 = vld [vmem:[%s1193_s6 + $0x10] sm:$0xff]   ;;  %vm398_vm4 = vcmask 1044480   ;;  %vm367_vm5 = vcmask 162816  }
  0x1e   :  { %782 = vmatprep.subr.bf16.mxu1 %v924_v1  ;;  %v863_v30 = vld [vmem:[%s1193_s6 + $0x8] sm:$0xff]   ;;  %v864_v31 = vld [vmem:[%s1193_s6] sm:$0xff]   ;;  %vm394_vm6 = vcmask 80896   ;;  %v866_v55 = vld [vmem:[%s1197_s10 + $0x18] sm:$0xff]   ;;  %s927_s18 = smov [#allocation4]  }
  0x1f   :  { %765 = vmatpush3.bf16.msra.mxu0 %v852_v14  ;;  %v678_v32 = vld [vmem:[%s1192_s5] ss:$0 sm:$0xff]  ;;  %v867_v57 = vld [vmem:[%s1197_s10 + $0x10] sm:$0xff]   ;;  %v868_v58 = vld [vmem:[%s1197_s10 + $0x8] sm:$0xff]   ;;  %s656_s19 = sshll.u32 %s927_s18, 4  ;;  %s657_s19 = int_to_ptr.vmem [resolvable:$true] %s656_s19 }
  0x20   :  { %820 = vmatprep.subr.bf16.mxu0 %v924_v1  ;;  %v865_v40 = vld [vmem:[%s1195_s8] sm:$0x1f]   ;;  %s926_s8 = smov 118   ;;  %v870_v60 = vld [vmem:[%s1199_s12 + $0x38] sm:$0xff]   ;;  %v871_v61 = vld [vmem:[%s1199_s12 + $0x30] sm:$0xff]   ;;  %p885_p1 = scmp.lt.s32.totalorder %s657_s19, %s657_s19 }
  0x21   :  { %783 = vmatpush3.bf16.msra.mxu1 %v859_v18  ;;  %v400_v41 = vsel %vm398_vm4, %v865_v40, 0  ;;  %v687_v42 = vld [vmem:[%s1194_s7] ss:$0 sm:$0xff]  ;;  %v872_v62 = vld [vmem:[%s1199_s12 + $0x28] sm:$0xff]   ;;  %v874_v0 = vld [vmem:[%s1199_s12 + $0x18] sm:$0xff]  }
  0x22   :  { %767 = vmatmul.mubr.msk.bf16.vlgmr.msra.gmra.mxu0 %vm121_vm2, %v53_v17  ;;  %784 = vmatprep.subr.bf16.mxu1 %v924_v1  ;;  %v369_v51 = vld [vmem:[%s1188_s1] sm:$0xff]  ;;  %v875_v2 = vld [vmem:[%s1199_s12 + $0x10] sm:$0xff]   ;;  %v876_v11 = vld [vmem:[%s1199_s12 + $0x8] sm:$0xff]   ;;  %s880_s1 = scalar_lea.vmem %s657_s19, 128 }
  0x23   :  { %836 = vmatprep.mubr.msk.bf16.mxu0 %vm925_vm1, %v924_v1  ;;  %v869_v59 = vld [vmem:[%s1197_s10] sm:$0xff]   ;;  %821 = vmatpush3.bf16.msra.mxu0 %v870_v60  ;;  %p881_p0 = scmp.ne.s32.totalorder %s657_s19, %s880_s1  ;;  %p886_p2 = scmp.lt.s32.totalorder %s880_s1, %s880_s1 }
  0x24   :  { %822 = vmatprep.subr.bf16.mxu0 %v924_v1  ;;  %v873_v63 = vld [vmem:[%s1199_s12 + $0x20] sm:$0xff]  }
  0x25   :  { %785 = vmatpush3.bf16.msra.mxu1 %v860_v19  ;;  %v693_v3 = vld [vmem:[%s1196_s9] ss:$0 sm:$0xff]  ;;  %p887_p3 = por %p886_p2, %p885_p1 }
  0x26   :  { %790 = vmatprep.subr.bf16.mxu1 %v924_v1  ;;  %v877_v12 = vld [vmem:[%s1199_s12] sm:$0xff]  }
  0x27   :  { %823 = vmatpush3.bf16.msra.mxu0 %v871_v61  ;;  %v696_v13 = vld [vmem:[%s1198_s11] ss:$0 sm:$0xff]  ;;  %p888_p4 = pnand %p887_p3, %p881_p0 }
  0x28   :  { %824 = vmatprep.subr.bf16.mxu0 %v924_v1 }
  0x2b   :  { %825 = vmatpush3.bf16.msra.mxu0 %v872_v62 }
  0x2c   :  { %826 = vmatprep.subr.bf16.mxu0 %v924_v1 }
  0x2f   :  { %827 = vmatpush3.bf16.msra.mxu0 %v873_v63 }
  0x30   :  { %828 = vmatprep.subr.bf16.mxu0 %v924_v1 }
  0x33   :  { %829 = vmatpush3.bf16.msra.mxu0 %v874_v0 }
  0x34   :  { %830 = vmatprep.subr.bf16.mxu0 %v924_v1 }
  0x37   :  { %831 = vmatpush3.bf16.msra.mxu0 %v875_v2 }
  0x38   :  { %832 = vmatprep.subr.bf16.mxu0 %v924_v1 }
  0x3b   :  { %833 = vmatpush3.bf16.msra.mxu0 %v876_v11 }
  0x3c   :  { %834 = vmatprep.subr.bf16.mxu0 %v924_v1 }
  0x3f   :  { %835 = vmatpush3.bf16.msra.mxu0 %v877_v12 }
  0xe2   :  { %v163_v21 = vpop.f32.mrf.mxu0 }
  0xe3   :  { %v164_v22 = vadd.f32 %v668_v20, %v163_v21 }
  0xe4   :  { %v768_v23 = vpop.f32.mrf.mxu0 }
  0xe5   :  { %v169_v24 = vmax.f32 %v164_v22, 0.0 }
  0xe6   :  { %v166_v25 = vpop.f32.mrf.mxu0 }
  0xe7   :  { %v170_v27 = vpack.c.bf16 %v169_v24, %v169_v24 }
  0xe8   :  { %v769_v28 = vpop.f32.mrf.mxu0 }
  0xe9   :  { %787 = vmatmul.mubr.bf16.vlgmr.msra.gmra.mxu1 %v170_v27 }
  0xea   :  { %791 = vmatpush3.bf16.msra.mxu1 %v861_v26  ;;  %798 = vmatprep.mubr.msk.bf16.mxu1 %vm925_vm1, %v924_v1 }
  0xeb   :  { %792 = vmatprep.subr.bf16.mxu1 %v924_v1 }
  0xee   :  { %793 = vmatpush3.bf16.msra.mxu1 %v862_v29 }
  0xef   :  { %794 = vmatprep.subr.bf16.mxu1 %v924_v1 }
  0xf2   :  { %795 = vmatpush3.bf16.msra.mxu1 %v863_v30 }
  0xf3   :  { %796 = vmatprep.subr.bf16.mxu1 %v924_v1 }
  0xf6   :  { %797 = vmatpush3.bf16.msra.mxu1 %v864_v31 }
  0xf7   :  { %802 = vmatprep.subr.bf16.mxu1 %v924_v1 }
 0x1a9   :  { %v276_v33 = vpop.f32.mrf.mxu1 }
 0x1aa   :  { %v277_v34 = vadd.f32 %v678_v32, %v276_v33 }
 0x1ab   :  { %v788_v35 = vpop.f32.mrf.mxu1 }
 0x1ac   :  { %v282_v36 = vmax.f32 %v277_v34, 0.0 }
 0x1ad   :  { %v279_v37 = vpop.f32.mrf.mxu1 }
 0x1ae   :  { %v283_v38 = vpack.c.bf16 %v282_v36, %v282_v36 }
 0x1af   :  { %v789_v39 = vpop.f32.mrf.mxu1 }
 0x1b0   :  { %799 = vmatmul.mubr.msk.bf16.vlgmr.msra.gmra.mxu1 %vm323_vm3, %v283_v38 }
 0x1b1   :  { %804 = vmatprep.mubr.msk.bf16.mxu1 %vm925_vm1, %v924_v1  ;;  %803 = vmatpush3.bf16.msra.mxu1 %v400_v41 }
 0x1b2   :  { %808 = vmatprep.subr.bf16.mxu1 %v924_v1 }
 0x270   :  { %v361_v43 = vpop.f32.mrf.mxu1 }
 0x271   :  { %v362_v44 = vadd.f32 %v687_v42, %v361_v43 }
 0x272   :  { %v800_v45 = vpop.f32.mrf.mxu1 }
 0x273   :  { %v370_v46 = vmul.f32 0.5, %v362_v44  ;;  %368 = vst.msk [vmem:[#allocation4] sm:$0xff] %vm367_vm5, %v362_v44 }
 0x274   :  { %v364_v47 = vpop.f32.mrf.mxu1 }
 0x275   :  { %v371_v48 = vmul.f32 1.442695, %v370_v46 }
 0x276   :  { %v801_v49 = vpop.f32.mrf.mxu1 }
 0x277   :  { %878 = vpow2.f32 %v371_v48 }
 0x284   :  { %v879_v50 = vpop.eup %878 }
 0x285   :  { %374 = vrot.lane.b32.xlu0 %v879_v50, %s926_s8 }
 0x2f7   :  { %v375_v52 = vpop.permute.xlu0 %374 }
 0x2f8   :  { %v377_v53 = vmul.f32 %v375_v52, %v369_v51 }
 0x2fa   :  { %v378_v54 = vadd.f32 %v377_v53, %v362_v44 }
 0x2fc   :  { %v379_v56 = vpack.c.bf16 %v378_v54, %v378_v54 }
 0x2fe   :  { %805 = vmatmul.mubr.msk.bf16.vlgmr.msra.gmra.mxu1 %vm394_vm6, %v379_v56 }
 0x2ff   :  { %809 = vmatpush3.bf16.msra.mxu1 %v866_v55  ;;  %816 = vmatprep.mubr.msk.bf16.mxu1 %vm925_vm1, %v924_v1 }
 0x300   :  { %810 = vmatprep.subr.bf16.mxu1 %v924_v1 }
 0x303   :  { %811 = vmatpush3.bf16.msra.mxu1 %v867_v57 }
 0x304   :  { %812 = vmatprep.subr.bf16.mxu1 %v924_v1 }
 0x307   :  { %813 = vmatpush3.bf16.msra.mxu1 %v868_v58 }
 0x308   :  { %814 = vmatprep.subr.bf16.mxu1 %v924_v1 }
 0x30b   :  { %815 = vmatpush3.bf16.msra.mxu1 %v869_v59 }
 0x3be   :  { %v436_v4 = vpop.f32.mrf.mxu1 }
 0x3bf   :  { %v437_v5 = vadd.f32 %v693_v3, %v436_v4 }
 0x3c0   :  { %v806_v6 = vpop.f32.mrf.mxu1 }
 0x3c1   :  { %v442_v7 = vmax.f32 %v437_v5, 0.0 }
 0x3c2   :  { %v439_v8 = vpop.f32.mrf.mxu1 }
 0x3c3   :  { %v443_v9 = vpack.c.bf16 %v442_v7, %v442_v7 }
 0x3c4   :  { %v807_v10 = vpop.f32.mrf.mxu1 }
 0x3c5   :  { %817 = vmatmul.mubr.msk.bf16.vlgmr.msra.gmra.mxu1 %vm323_vm3, %v443_v9 }
 0x485   :  { %v520_v14 = vpop.f32.mrf.mxu1 }
 0x486   :  { %v521_v15 = vadd.f32 %v696_v13, %v520_v14 }
 0x487   :  { %v818_v16 = vpop.f32.mrf.mxu1 }
 0x488   :  { %v526_v17 = vmax.f32 %v521_v15, 0.0 }
 0x489   :  { %v523_v18 = vpop.f32.mrf.mxu1 }
 0x48a   :  { %v527_v19 = vpack.c.bf16 %v526_v17, %v526_v17 }
 0x48b   :  { %v819_v20 = vpop.f32.mrf.mxu1 }
 0x48c   :  { %837 = vmatmul.mubr.bf16.vlgmr.msra.gmra.mxu0 %v527_v19 }
 0x48d   :  { %891 = shalt.err (!%p888_p4)
}
 0x48e   :  { %659 = dma.vmem_to_hbm [thread:$0]  %s657_s19, 128, %s1202_s15, [#allocation5]   ;;  %v702_v1 = vld [vmem:[%s1200_s13] ss:$0 sm:$0xff] }
 0x48f   :  { %s928_s22 = smov [#allocation2]  }
 0x490   :  { %s646_s23 = sshll.u32 %s928_s22, 4  ;;  %s647_s23 = int_to_ptr.vmem [resolvable:$true] %s646_s23 }
 0x491   :  { %s900_s4 = scalar_lea.vmem %s647_s23, 128  ;;  %p905_p6 = scmp.lt.s32.totalorder %s647_s23, %s647_s23 }
 0x492   :  { %p901_p5 = scmp.ne.s32.totalorder %s647_s23, %s900_s4  ;;  %p906_p7 = scmp.lt.s32.totalorder %s900_s4, %s900_s4 }
 0x494   :  { %p907_p8 = por %p906_p7, %p905_p6 }
 0x496   :  { %p908_p9 = pnand %p907_p8, %p901_p5 }
 0x54c   :  { %v633_v21 = vpop.f32.mrf.mxu0 }
 0x54d   :  { %v634_v22 = vadd.f32 %v702_v1, %v633_v21 }
 0x54e   :  { %v838_v23 = vpop.f32.mrf.mxu0 }
 0x54f   :  { %639 = vst.msk [vmem:[#allocation2] sm:$0xff] %vm121_vm2, %v634_v22 }
 0x550   :  { %v636_v24 = vpop.f32.mrf.mxu0 }
 0x551   :  { %911 = shalt.err (!%p908_p9)
}
 0x552   :  { %649 = dma.vmem_to_hbm [thread:$0]  %s647_s23, 128, %s1201_s14, [#allocation3]   ;;  %v839_v25 = vpop.f32.mrf.mxu0 }
 0x553   :  { %920 = dma.done.wait [#allocation3], 128  }
 0x554   :  { %921 = vsyncadd [#allocation3], 4294967168 }
 0x555   :  { %922 = dma.done.wait [#allocation5], 128  }
 0x556   :  { %923 = vsyncadd [#allocation5], 4294967168 }
 0x557   :  { %666 = vsyncpa [#allocation3], 1 }
 0x558   :  { %667 = vsyncpa [#allocation5], 1 }

</bundles_post_ra>
